<compile_context>
chip_gen: v6e
topology: v6e:2x2x1
jax: 0.10.0
libtpu: 0.0.40
codegen_flags: <defaults>
</compile_context>

<pallas_src>
import jax
import jax.numpy as jnp
from jax.experimental import pallas as pl
from jax.experimental.pallas import tpu as pltpu


def _neg_logsigmoid_kernel(pos_ref, out_ref):
    """loss = -logsigmoid(x) = max(-x, 0) + log1p(exp(-|x|)), computed stably."""
    x = pos_ref[...].astype(jnp.float32)
    y = jnp.maximum(-x, 0.0) + jnp.log1p(jnp.exp(-jnp.abs(x)))
    out_ref[...] = y.astype(out_ref.dtype)


_LANE_CANDIDATES = (1024, 896, 768, 640, 512, 384, 256, 128)
_ROW_TILE_CAP = 1024  # 1024 x 1024 f32 = 4 MiB/buffer; double-buffered in+out ~16 MiB.


def _sublane_pack(dtype):
    # Packed-tile sublane requirement: 8 for 32-bit, 16 for 16-bit, 32 for 8-bit.
    return {1: 32, 2: 16, 4: 8}.get(jnp.dtype(dtype).itemsize, 8)


def _plan_view(total, b, nl, dtype):
    """Exact (rows, lanes) factorization of `total` (no padding) + row-tile size."""
    lanes = next((c for c in _LANE_CANDIDATES if total % c == 0), 0)
    if lanes:
        rows = total // lanes
    else:
        # Ragged total: use the natural (B, N*L) view. A full-extent lane block
        # is legal for any width; partial row blocks are handled by the grid.
        rows, lanes = b, nl

    sub = _sublane_pack(dtype)
    if rows <= sub:
        tile_rows = rows  # full-extent block, legal for any value
    else:
        # Aim for >= 2 grid steps so "parallel" can shard across v7x's 2 TCs
        # (no-op on v5e/v6e), capped so double-buffered tiles stay inside VMEM.
        tile_rows = min(_ROW_TILE_CAP, sub * pl.cdiv(rows, sub * 2))
        tile_rows = max(tile_rows, sub)
    return rows, lanes, tile_rows


def weighted_bce_loss_rmsn(pos_scores, neg_scores, temperature):
    """Forward of WeightedBCELoss_rmsn. Returns -logsigmoid(pos) as (B, N*L).

    softmax(neg_scores / T) and the softplus-weighted neg_part are dead in the
    reference forward's returned value, so they are not computed here.
    """
    del neg_scores, temperature  # dead in the reference module's returned loss

    B, N, L = pos_scores.shape
    dtype = pos_scores.dtype
    total = B * N * L

    rows, lanes, tile_rows = _plan_view(total, B, N * L, dtype)
    x2d = pos_scores.reshape(rows, lanes)  # exact factorization -> free reshape

    grid = (pl.cdiv(rows, tile_rows),)
    itemsize = jnp.dtype(dtype).itemsize
    cost = pl.CostEstimate(
        flops=4 * total,             # max, abs, neg, add per element
        transcendentals=2 * total,   # exp + log1p per element
        bytes_accessed=2 * total * itemsize,
    )

    out2d = pl.pallas_call(
        _neg_logsigmoid_kernel,
        grid=grid,
        in_specs=[pl.BlockSpec((tile_rows, lanes), lambda i: (i, 0))],
        out_specs=pl.BlockSpec((tile_rows, lanes), lambda i: (i, 0)),
        out_shape=jax.ShapeDtypeStruct((rows, lanes), dtype),
        compiler_params=pltpu.CompilerParams(
            dimension_semantics=("parallel",),
        ),
        cost_estimate=cost,
        # NOTE: input_output_aliases={0: 0} would drop the output allocation,
        # but it only pays off when callers donate pos_scores; omitted so XLA
        # never inserts a defensive copy for non-donated inputs.
    )(x2d)

    return out2d.reshape(B, N * L)  # rows * lanes == total -> free reshape


def _reference(pos_scores, neg_scores, temperature):
    # Pure-JAX reference of the PyTorch forward.
    B, N, L = pos_scores.shape
    pos = pos_scores.reshape(B, N * L)
    weight = jax.nn.softmax(neg_scores / temperature, axis=-1)
    _ = jnp.mean(jax.nn.softplus(neg_scores) * weight, axis=-1)  # discarded
    return -jax.nn.log_sigmoid(pos)


if __name__ == "__main__":
    key = jax.random.PRNGKey(0)
    k1, k2 = jax.random.split(key)

    temperature = 0.07  # module "parameter" from __init__

    # Case 1: ragged total (2*4*8 = 64, not a multiple of 128) -> (B, N*L) view.
    B, N, L, NUM_NEGS = 2, 4, 8, 16
    pos_scores = jax.random.normal(k1, (B, N, L), dtype=jnp.float32)
    neg_scores = jax.random.normal(k2, (B, N, NUM_NEGS), dtype=jnp.float32)
    out = jax.block_until_ready(
        weighted_bce_loss_rmsn(pos_scores, neg_scores, temperature))
    ref = _reference(pos_scores, neg_scores, temperature)
    assert out.shape == (B, N * L), out.shape
    assert jnp.allclose(out, ref, atol=1e-5, rtol=1e-5), "mismatch vs reference (ragged)"

    # Case 2: lane-dense total (2*4*128 = 1024) -> factorized (rows, lanes) view.
    B2, N2, L2 = 2, 4, 128
    pos2 = jax.random.normal(k1, (B2, N2, L2), dtype=jnp.float32)
    neg2 = jax.random.normal(k2, (B2, N2, NUM_NEGS), dtype=jnp.float32)
    out2 = jax.block_until_ready(
        weighted_bce_loss_rmsn(pos2, neg2, temperature))
    ref2 = _reference(pos2, neg2, temperature)
    assert out2.shape == (B2, N2 * L2), out2.shape
    assert jnp.allclose(out2, ref2, atol=1e-5, rtol=1e-5), "mismatch vs reference (dense)"

    print("KERNEL_OK")
</pallas_src>

<mosaic_0001>
module attributes {stable_mosaic.version = 11 : i64} {
  func.func @_neg_logsigmoid_kernel(%arg0: i32, %arg1: memref<2x32xf32, #tpu.memory_space<vmem>>, %arg2: memref<2x32xf32, #tpu.memory_space<vmem>>) attributes {dimension_semantics = [#tpu.dimension_semantics<parallel>], iteration_bounds = array<i64: 1>, scalar_prefetch = 0 : i64, scratch_operands = 0 : i64, tpu.core_type = #tpu.core_type<tc>, window_params = [{transform_indices = @transform_0, window_bounds = array<i64: 2, 32>}, {transform_indices = @transform_1, window_bounds = array<i64: 2, 32>}]} {
    %c0 = arith.constant 0 : index
    %c0_0 = arith.constant 0 : index
    %0 = vector.load %arg1[%c0, %c0_0] : memref<2x32xf32, #tpu.memory_space<vmem>>, vector<2x32xf32>
    %cst = arith.constant 0.000000e+00 : f32
    %1 = vector.broadcast %cst : f32 to vector<2x32xf32>
    %2 = arith.subf %1, %0 : vector<2x32xf32>
    %cst_1 = arith.constant 0.000000e+00 : f32
    %3 = vector.broadcast %cst_1 : f32 to vector<2x32xf32>
    %4 = arith.maximumf %2, %3 : vector<2x32xf32>
    %5 = math.absf %0 : vector<2x32xf32>
    %cst_2 = arith.constant 0.000000e+00 : f32
    %6 = vector.broadcast %cst_2 : f32 to vector<2x32xf32>
    %7 = arith.subf %6, %5 : vector<2x32xf32>
    %8 = math.exp %7 : vector<2x32xf32>
    %9 = math.log1p %8 : vector<2x32xf32>
    %10 = arith.addf %4, %9 : vector<2x32xf32>
    %c0_3 = arith.constant 0 : index
    %c0_4 = arith.constant 0 : index
    %11 = vector.load %arg2[%c0_3, %c0_4] : memref<2x32xf32, #tpu.memory_space<vmem>>, vector<2x32xf32>
    tpu.vector_store %arg2[%c0_3, %c0_4], %10 {strides = array<i32>} : memref<2x32xf32, #tpu.memory_space<vmem>>, vector<2x32xf32>,
    return
  }
  func.func @transform_0(%arg0: i32) -> (i32, i32) {
    %c0_i32 = arith.constant 0 : i32
    %c0_i32_0 = arith.constant 0 : i32
    return %arg0, %c0_i32 : i32, i32
  }
  func.func @transform_1(%arg0: i32) -> (i32, i32) {
    %c0_i32 = arith.constant 0 : i32
    %c0_i32_0 = arith.constant 0 : i32
    return %arg0, %c0_i32 : i32, i32
  }
}

</mosaic_0001>

<bundles_post_ra>
// kernel: tpu_custom_call.1
= control target key start
LH: loop header
LB: loop body
LE: loop exit
PB: predicated region body
PF: predicated region fallthrough
CT: control target
= control target key end

     0   :  { %6 = vsyncpa [#allocation3], 0  ;;  %s123_s0 = inlined_call_operand.hbm [shape: f32[2,32], index: 0, kind: input, shape index: {}]   ;;  %s124_s1 = inlined_call_operand.hbm [shape: f32[2,32], index: 1, kind: output, shape index: {}]  }
   0x1   :  { %7 = vsyncpa [#allocation4], 0  ;;  %s105_s6 = smov [#allocation2]  }
   0x2   :  { %s14_s7 = sshll.u32 %s105_s6, 4  ;;  %s15_s7 = int_to_ptr.vmem [resolvable:$true] %s14_s7 }
   0x3   :  { %s69_s8 = scalar_lea.vmem %s15_s7, 32  ;;  %p74_p1 = scmp.lt.s32.totalorder %s15_s7, %s15_s7 }
   0x4   :  { %p70_p0 = scmp.ne.s32.totalorder %s15_s7, %s69_s8  ;;  %p75_p2 = scmp.lt.s32.totalorder %s69_s8, %s69_s8 }
   0x6   :  { %p76_p3 = por %p75_p2, %p74_p1 }
   0x8   :  { %p77_p4 = pnand %p76_p3, %p70_p0 }
   0xa   :  { %80 = shalt.err (!%p77_p4)
}
   0xb   :  { %17 = dma.hbm_to_vmem [thread:$0]  %s123_s0, 32, %s15_s7, [#allocation3]  }
   0xc   :  { %101 = dma.done.wait [#allocation3], 32  }
   0xd   :  { %102 = vsyncadd [#allocation3], 4294967264  ;;  %v21_v0 = vld [vmem:[#allocation2] sm:$0x3]  ;;  %s106_s0 = smov [#allocation5]   ;;  %vm38_vm1 = vcmask 254976  }
   0xe   :  { %v24_v1 = vand.u32 2147483647, %v21_v0  ;;  %v22_v8 = vsub.f32 0.0, %v21_v0  ;;  %s46_s11 = sshll.u32 %s106_s0, 4  ;;  %s47_s11 = int_to_ptr.vmem [resolvable:$true] %s46_s11 }
   0xf   :  { %s81_s12 = scalar_lea.vmem %s47_s11, 32  ;;  %p86_p6 = scmp.lt.s32.totalorder %s47_s11, %s47_s11 }
  0x10   :  { %v25_v2 = vsub.f32 0.0, %v24_v1  ;;  %v23_v12 = vmax.f32 %v22_v8, 0.0  ;;  %p82_p5 = scmp.ne.s32.totalorder %s47_s11, %s81_s12  ;;  %p87_p7 = scmp.lt.s32.totalorder %s81_s12, %s81_s12 }
  0x12   :  { %v26_v3 = vmul.f32 1.442695, %v25_v2  ;;  %p88_p8 = por %p87_p7, %p86_p6 }
  0x14   :  { %57 = vpow2.f32 %v26_v3  ;;  %p89_p9 = pnand %p88_p8, %p82_p5 }
  0x21   :  { %v58_v4 = vpop.eup %57 }
  0x22   :  { %v28_v5 = vadd.f32 1.0, %v58_v4  ;;  %v31_v6 = vmul.f32 -0.5, %v58_v4  ;;  %v34_v9 = vand.u32 2147483647, %v58_v4 }
  0x24   :  { %59 = vlog2.f32 %v28_v5  ;;  %v32_v7 = vadd.f32 1.0, %v31_v6  ;;  %vm35_vm0 = vcmp.lt.f32.partialorder %v34_v9, 0.0004427343 }
  0x26   :  { %v33_v10 = vmul.f32 %v58_v4, %v32_v7 }
  0x31   :  { %v60_v11 = vpop.eup %59 }
  0x32   :  { %v30_v13 = vmul.f32 0.6931472, %v60_v11 }
  0x34   :  { %v36_v14 = vsel %vm35_vm0, %v33_v10, %v30_v13 }
  0x35   :  { %v37_v15 = vadd.f32 %v36_v14, %v23_v12 }
  0x37   :  { %39 = vst.msk [vmem:[#allocation5] sm:$0x3] %vm38_vm1, %v37_v15 }
  0x38   :  { %92 = shalt.err (!%p89_p9)
}
  0x39   :  { %49 = dma.vmem_to_hbm [thread:$0]  %s47_s11, 32, %s124_s1, [#allocation4]  }
  0x3a   :  { %103 = dma.done.wait [#allocation4], 32  }
  0x3b   :  { %104 = vsyncadd [#allocation4], 4294967264 }
  0x3c   :  { %53 = vsyncpa [#allocation3], 1 }
  0x3d   :  { %54 = vsyncpa [#allocation4], 1 }

</bundles_post_ra>
